<compile_context>
chip_gen: v7x
topology: tpu7x:2x2x1
jax: 0.10.0
libtpu: 0.0.40
codegen_flags: <defaults>
</compile_context>

<pallas_src>
import functools

import numpy as np
import jax
import jax.numpy as jnp
from jax.experimental import pallas as pl
from jax.experimental.pallas import tpu as pltpu

GN_EPS = 1e-5                      # nn.GroupNorm default eps
VMEM_LIMIT = 32 * 1024 * 1024      # safe on v5e/v6e/v7x for these tile sizes
# TODO(synk): size the time tile / vmem_limit_bytes per TPU generation
# (<=~40 MiB live on v7x, larger on v6e/v5e) and sweep pl.Buffered depth.


# ---------------------------------------------------------------------------
# In-kernel helpers
# ---------------------------------------------------------------------------

def _silu(h):
    # sigmoid via EUP exp + approx reciprocal (keeps the divide off the VALU)
    return h * pl.reciprocal(1.0 + jnp.exp(-h), approx=True)


def _lane_moments(v):
    """Per-lane partial [sum, sum_sq] rows of a 2-D f32 tile -> (2, 128)."""
    if (v.shape[0] * v.shape[1]) % 128 == 0:
        vr = v.reshape(-1, 128)
        return jnp.stack([jnp.sum(vr, axis=0), jnp.sum(vr * vr, axis=0)], axis=0)
    # fallback for odd widths: spread the scalar sums evenly over the lanes
    s = jnp.sum(v) * (1.0 / 128.0)
    s2 = jnp.sum(v * v) * (1.0 / 128.0)
    return jnp.stack([jnp.broadcast_to(s, (128,)),
                      jnp.broadcast_to(s2, (128,))], axis=0)


def _gn_silu(v, stats_ref, n_elems, gamma_ref, beta_ref):
    """GroupNorm(num_groups=1) with *global* per-sample stats + affine + SiLU."""
    s = jnp.sum(stats_ref[0, :])
    s2 = jnp.sum(stats_ref[1, :])
    mu = s / n_elems
    var = jnp.maximum(s2 / n_elems - mu * mu, 0.0)
    h = (v - mu) * jax.lax.rsqrt(var + GN_EPS)
    h = h * gamma_ref[...] + beta_ref[...]
    return _silu(h)


def _tap_matmul(h, w_ref, bias_ref, out_w):
    """k=3 'same' conv as ONE MXU matmul on a tap-stacked window.

    h: (Cin, out_w + 2), already cast to matmul dtype and zero-masked at the
    sequence boundary.  w_ref: (O, 3*Cin) with layout w[o, k*Cin + c].
    """
    hcat = jnp.concatenate([h[:, k:k + out_w] for k in range(3)], axis=0)
    return jnp.dot(w_ref[...], hcat,
                   preferred_element_type=jnp.float32) + bias_ref[...]
    # TODO(synk): for tiny channel counts, a VPU broadcast-MAC path (or folding
    # batch into the lane axis) would beat this tiny MXU matmul.


# ---------------------------------------------------------------------------
# Kernel 1: per-batch [sum, sum_sq] of x (GroupNorm-1 global statistics)
# ---------------------------------------------------------------------------

def _moments_kernel(xw_ref, st_ref, *, center_off, center_len):
    t = pl.program_id(1)
    xc = xw_ref[:, center_off:center_off + center_len].astype(jnp.float32)
    tile = _lane_moments(xc)

    @pl.when(t == 0)
    def _():
        st_ref[...] = tile

    @pl.when(t > 0)
    def _():
        st_ref[...] += tile


# ---------------------------------------------------------------------------
# Kernel 2: block1 (GN1 -> SiLU -> conv1 k=3) + GN2-stat accumulation
# ---------------------------------------------------------------------------

def _block1_kernel(xst_ref, xw_ref, g1_ref, bt1_ref, w1_ref, cb1_ref,
                   h1_ref, hst_ref, *,
                   eh_l, oh_l, oh_r, tt, seq_len, n_in, matmul_dtype):
    t = pl.program_id(1)
    out_w = tt + oh_l + oh_r                     # overlapped tile written out

    x = xw_ref[...].astype(jnp.float32)          # (C, tt + 2*(oh_l+oh_r))
    h = _gn_silu(x, xst_ref, n_in, g1_ref, bt1_ref)

    # conv "same" zero padding applies POST-activation: mask columns whose
    # global index falls outside [0, seq_len)
    g = t * tt - eh_l + jax.lax.broadcasted_iota(jnp.int32, h.shape, 1)
    h = jnp.where((g >= 0) & (g < seq_len), h, 0.0).astype(matmul_dtype)

    y = _tap_matmul(h, w1_ref, cb1_ref, out_w)   # (O, out_w) f32
    h1_ref[...] = y.astype(h1_ref.dtype)

    # accumulate global GroupNorm-2 statistics over this tile's OWNED columns
    tile = _lane_moments(y[:, oh_l:oh_l + tt])

    @pl.when(t == 0)
    def _():
        hst_ref[...] = tile

    @pl.when(t > 0)
    def _():
        hst_ref[...] += tile


# ---------------------------------------------------------------------------
# Kernel 3: block2 (GN2 -> SiLU -> conv2 k=3) + skip + residual add
# ---------------------------------------------------------------------------

def _block2_kernel(hst_ref, h1w_ref, xw_ref, g2_ref, bt2_ref, w2_ref, cb2_ref,
                   *rest, oh_l, eh_l, tt, seq_len, n_hid, matmul_dtype,
                   has_skip_conv):
    if has_skip_conv:
        ws_ref, bs_ref, o_ref = rest
    else:
        (o_ref,) = rest
    t = pl.program_id(1)

    h1 = h1w_ref[...].astype(jnp.float32)        # (O, tt + oh_l + oh_r)
    h = _gn_silu(h1, hst_ref, n_hid, g2_ref, bt2_ref)

    g = t * tt - oh_l + jax.lax.broadcasted_iota(jnp.int32, h.shape, 1)
    h = jnp.where((g >= 0) & (g < seq_len), h, 0.0).astype(matmul_dtype)

    y = _tap_matmul(h, w2_ref, cb2_ref, tt)      # (O, tt) f32

    x_c = xw_ref[:, eh_l:eh_l + tt]              # (C, tt) center columns
    if has_skip_conv:
        y = y + jnp.dot(ws_ref[...], x_c.astype(matmul_dtype),
                        preferred_element_type=jnp.float32) + bs_ref[...]
    else:
        # identity skip (C == O): exact residual add, no matmul, no rounding
        y = y + x_c.astype(jnp.float32)

    o_ref[...] = y.astype(o_ref.dtype)


# ---------------------------------------------------------------------------
# Host wrapper
# ---------------------------------------------------------------------------

def _pick_time_tile(t_len, requested):
    if requested and requested % 128 == 0 and t_len % requested == 0:
        return requested
    for cand in (2048, 1024, 512, 256, 128):
        if t_len % cand == 0:
            return cand
    return t_len      # single tile; still correct, just no time pipelining


def unpatcher_forward(x_bcl, params, *, patch_size, causal=False,
                      matmul_dtype=jnp.float32, acts_dtype=jnp.float32,
                      out_dtype=jnp.float32, time_tile=128):
    """x_bcl: (B, in_channels, L) -> (B, out_channels, L * patch_size)."""
    # TODO(synk): context_mapping_features / MappingToScaleShift path is not
    # instantiated in this configuration (mapping=None) and is not implemented.
    b, cin, l = x_bcl.shape
    assert cin % patch_size == 0
    c = cin // patch_size
    t_len = l * patch_size
    o = params["conv1_w"].shape[0]
    has_skip_conv = (c != o)
    assert ("skip_w" in params) == has_skip_conv

    offsets = (-2, -1, 0) if causal else (-1, 0, 1)
    oh_l, oh_r = -min(offsets), max(offsets)     # halo for one k=3 conv
    eh_l, eh_r = 2 * oh_l, 2 * oh_r              # halo for two chained convs

    tt = _pick_time_tile(t_len, time_tile)
    n_t = t_len // tt
    ttw = tt + eh_l + eh_r
    w1out = tt + oh_l + oh_r

    # rearrange 'b (c p) l -> b c (l p)' + zero-padded overlapping time windows
    # (pure layout glue on the host; halo recomputed by block1 so block2 needs
    #  no cross-tile reads)
    x = x_bcl.reshape(b, c, patch_size, l).transpose(0, 1, 3, 2).reshape(b, c, t_len)
    x_pad = jnp.pad(x, ((0, 0), (0, 0), (eh_l, eh_r))).astype(acts_dtype)
    x_win = jnp.stack([x_pad[:, :, i * tt: i * tt + ttw] for i in range(n_t)],
                      axis=1)                                   # (B, n_t, C, ttw)

    # weights: tap-major flatten, pre-cast matmul operands to matmul_dtype
    def flat(w):   # (O, Cin, K) -> (O, K*Cin) with wflat[o, k*Cin + c] = w[o, c, k]
        o_, ci, k = w.shape
        return jnp.transpose(w, (0, 2, 1)).reshape(o_, k * ci)

    col = lambda v: v.reshape(-1, 1).astype(jnp.float32)
    g1, bt1 = col(params["gn1_g"]), col(params["gn1_b"])
    w1 = flat(params["conv1_w"]).astype(matmul_dtype)
    cb1 = col(params["conv1_b"])
    g2, bt2 = col(params["gn2_g"]), col(params["gn2_b"])
    w2 = flat(params["conv2_w"]).astype(matmul_dtype)
    cb2 = col(params["conv2_b"])
    # TODO(synk): for large channel counts, pad O / 3C / 3O to 128 (v5e) or 256
    # (v6e/v7x) multiples to fill the MXU.

    def wspec(p):
        nd = p.ndim
        return pl.BlockSpec(tuple(p.shape), lambda i, j, _nd=nd: (0,) * _nd)

    xwin_spec = pl.BlockSpec((None, None, c, ttw), lambda i, j: (i, j, 0, 0))
    h1_spec = pl.BlockSpec((None, None, o, w1out), lambda i, j: (i, j, 0, 0))
    stats_spec = pl.BlockSpec((None, 2, 128), lambda i, j: (i, 0, 0))

    cp_reduce = pltpu.CompilerParams(
        dimension_semantics=("parallel", "arbitrary"),
        vmem_limit_bytes=VMEM_LIMIT)
    cp_parallel = pltpu.CompilerParams(
        dimension_semantics=("parallel", "parallel"),
        vmem_limit_bytes=VMEM_LIMIT)

    # --- pass A: global GN1 statistics of x -------------------------------
    x_stats = pl.pallas_call(
        functools.partial(_moments_kernel, center_off=eh_l, center_len=tt),
        out_shape=jax.ShapeDtypeStruct((b, 2, 128), jnp.float32),
        grid=(b, n_t),
        in_specs=[xwin_spec],
        out_specs=stats_spec,
        compiler_params=cp_reduce,
    )(x_win)

    # --- pass B: block1 + GN2 statistics (fused accumulator output) -------
    h1_win, h_stats = pl.pallas_call(
        functools.partial(_block1_kernel, eh_l=eh_l, oh_l=oh_l, oh_r=oh_r,
                          tt=tt, seq_len=t_len, n_in=float(c * t_len),
                          matmul_dtype=matmul_dtype),
        out_shape=(jax.ShapeDtypeStruct((b, n_t, o, w1out), acts_dtype),
                   jax.ShapeDtypeStruct((b, 2, 128), jnp.float32)),
        grid=(b, n_t),
        in_specs=[stats_spec, xwin_spec,
                  wspec(g1), wspec(bt1), wspec(w1), wspec(cb1)],
        out_specs=(h1_spec, stats_spec),
        compiler_params=cp_reduce,
    )(x_stats, x_win, g1, bt1, w1, cb1)

    # --- pass C: block2 + skip + residual (fully parallel grid) -----------
    if has_skip_conv:
        ws = params["skip_w"].astype(matmul_dtype)
        bs = col(params["skip_b"])
        extra_in, extra_specs = [ws, bs], [wspec(ws), wspec(bs)]
    else:
        extra_in, extra_specs = [], []

    out = pl.pallas_call(
        functools.partial(_block2_kernel, oh_l=oh_l, eh_l=eh_l, tt=tt,
                          seq_len=t_len, n_hid=float(o * t_len),
                          matmul_dtype=matmul_dtype,
                          has_skip_conv=has_skip_conv),
        out_shape=jax.ShapeDtypeStruct((b, o, t_len), out_dtype),
        grid=(b, n_t),
        in_specs=[stats_spec, h1_spec, xwin_spec,
                  wspec(g2), wspec(bt2), wspec(w2), wspec(cb2)] + extra_specs,
        out_specs=pl.BlockSpec((None, o, tt), lambda i, j: (i, 0, j)),
        compiler_params=cp_parallel,
    )(h_stats, h1_win, x_win, g2, bt2, w2, cb2, *extra_in)
    return out


# ---------------------------------------------------------------------------
# Parameters
# ---------------------------------------------------------------------------

def init_params(key, in_channels, out_channels, patch_size):
    c = in_channels // patch_size
    o = out_channels
    ks = jax.random.split(key, 10)
    rnd = lambda k, shape, s=0.1: jax.random.normal(k, shape, jnp.float32) * s
    p = {
        "gn1_g": 1.0 + 0.1 * jax.random.normal(ks[0], (c,), jnp.float32),
        "gn1_b": 0.1 * jax.random.normal(ks[1], (c,), jnp.float32),
        "conv1_w": rnd(ks[2], (o, c, 3)),
        "conv1_b": rnd(ks[3], (o,)),
        "gn2_g": 1.0 + 0.1 * jax.random.normal(ks[4], (o,), jnp.float32),
        "gn2_b": 0.1 * jax.random.normal(ks[5], (o,), jnp.float32),
        "conv2_w": rnd(ks[6], (o, o, 3)),
        "conv2_b": rnd(ks[7], (o,)),
    }
    if c != o:   # ResnetBlock1d.to_out is a real 1x1 conv only when C != O
        p["skip_w"] = rnd(ks[8], (o, c))
        p["skip_b"] = rnd(ks[9], (o,))
    return p


# ---------------------------------------------------------------------------
# Pure-JAX reference (same math, no Pallas) for correctness
# ---------------------------------------------------------------------------

def reference_forward(x_bcl, params, *, patch_size, causal=False):
    b, cin, l = x_bcl.shape
    c = cin // patch_size
    t = l * patch_size
    x = x_bcl.reshape(b, c, patch_size, l).transpose(0, 1, 3, 2).reshape(b, c, t)
    x = x.astype(jnp.float32)
    hp = jax.lax.Precision.HIGHEST

    def gn_silu(z, g, bta):
        mu = z.mean(axis=(1, 2), keepdims=True)
        var = ((z - mu) ** 2).mean(axis=(1, 2), keepdims=True)
        h = (z - mu) / jnp.sqrt(var + GN_EPS)
        h = h * g[None, :, None] + bta[None, :, None]
        return h / (1.0 + jnp.exp(-h))

    def conv3(z, w, bb):
        pads = (2, 0) if causal else (1, 1)
        zp = jnp.pad(z, ((0, 0), (0, 0), pads))
        y = sum(jnp.einsum("oc,bct->bot", w[:, :, k], zp[:, :, k:k + t],
                           precision=hp) for k in range(3))
        return y + bb[None, :, None]

    h = gn_silu(x, params["gn1_g"], params["gn1_b"])
    h = conv3(h, params["conv1_w"], params["conv1_b"])
    h = gn_silu(h, params["gn2_g"], params["gn2_b"])
    h = conv3(h, params["conv2_w"], params["conv2_b"])
    if "skip_w" in params:
        skip = jnp.einsum("oc,bct->bot", params["skip_w"], x, precision=hp) \
               + params["skip_b"][None, :, None]
    else:
        skip = x
    return h + skip


# ---------------------------------------------------------------------------

if __name__ == "__main__":
    key = jax.random.PRNGKey(0)
    k1, k2, k3, k4 = jax.random.split(key, 4)

    # Config 1: C != O (real 1x1 skip conv), non-causal, 4 time tiles of 128.
    B, IN, OUT, P, L = 2, 16, 8, 4, 128          # C=4, O=8, T=512
    x1 = jax.random.normal(k1, (B, IN, L), jnp.float32)
    p1 = init_params(k2, IN, OUT, P)
    out1 = jax.block_until_ready(
        unpatcher_forward(x1, p1, patch_size=P, causal=False))
    assert out1.shape == (B, OUT, L * P)
    ref1 = reference_forward(x1, p1, patch_size=P, causal=False)
    np.testing.assert_allclose(np.asarray(out1), np.asarray(ref1),
                               rtol=1e-2, atol=1e-2)

    # Config 2: C == O (identity skip -> exact residual, no matmul), causal.
    IN2, OUT2, L2 = 32, 8, 96                    # C=8 == O=8, T=384 -> 3 tiles
    x2 = jax.random.normal(k3, (B, IN2, L2), jnp.float32)
    p2 = init_params(k4, IN2, OUT2, P)
    out2 = jax.block_until_ready(
        unpatcher_forward(x2, p2, patch_size=P, causal=True))
    ref2 = reference_forward(x2, p2, patch_size=P, causal=True)
    np.testing.assert_allclose(np.asarray(out2), np.asarray(ref2),
                               rtol=1e-2, atol=1e-2)

    # Config 3: bf16 activations in HBM + bf16 matmul operands (f32 accum).
    out3 = jax.block_until_ready(
        unpatcher_forward(x1, p1, patch_size=P, causal=False,
                          matmul_dtype=jnp.bfloat16, acts_dtype=jnp.bfloat16))
    np.testing.assert_allclose(np.asarray(out3), np.asarray(ref1),
                               rtol=5e-2, atol=5e-2)

    print("KERNEL_OK")
</pallas_src>

<mosaic_0001>
module attributes {stable_mosaic.version = 11 : i64} {
  func.func @_moments_kernel(%arg0: i32, %arg1: i32, %arg2: memref<1x1x4x132xf32, #tpu.memory_space<vmem>>, %arg3: memref<1x2x128xf32, #tpu.memory_space<vmem>>) attributes {dimension_semantics = [#tpu.dimension_semantics<parallel>, #tpu.dimension_semantics<arbitrary>], iteration_bounds = array<i64: 2, 4>, scalar_prefetch = 0 : i64, scratch_operands = 0 : i64, tpu.core_type = #tpu.core_type<tc>, window_params = [{transform_indices = @transform_0, window_bounds = array<i64: 1, 1, 4, 132>}, {transform_indices = @transform_1, window_bounds = array<i64: 1, 2, 128>}]} {
    %c0 = arith.constant 0 : index
    %c0_0 = arith.constant 0 : index
    %c0_1 = arith.constant 0 : index
    %c2 = arith.constant 2 : index
    %0 = vector.load %arg2[%c0, %c0_0, %c0_1, %c2] : memref<1x1x4x132xf32, #tpu.memory_space<vmem>>, vector<1x1x4x128xf32>
    %1 = vector.shape_cast %0 : vector<1x1x4x128xf32> to vector<4x128xf32>
    %cst = arith.constant dense<0.000000e+00> : vector<128xf32>
    %2 = vector.multi_reduction <add>, %1, %cst [0] : vector<4x128xf32> to vector<128xf32>
    %3 = arith.mulf %1, %1 : vector<4x128xf32>
    %cst_2 = arith.constant dense<0.000000e+00> : vector<128xf32>
    %4 = vector.multi_reduction <add>, %3, %cst_2 [0] : vector<4x128xf32> to vector<128xf32>
    %5 = vector.shape_cast %2 : vector<128xf32> to vector<1x128xf32>
    %6 = vector.shape_cast %4 : vector<128xf32> to vector<1x128xf32>
    %7 = tpu.concatenate %5, %6 in 0 : vector<1x128xf32>, vector<1x128xf32> -> vector<2x128xf32>
    %c0_i32 = arith.constant 0 : i32
    %8 = arith.cmpi eq, %arg1, %c0_i32 : i32
    %9 = arith.extui %8 : i1 to i32
    %c0_i32_3 = arith.constant 0 : i32
    %10 = arith.cmpi ne, %9, %c0_i32_3 : i32
    scf.if %10 {
      %c0_6 = arith.constant 0 : index
      %c0_7 = arith.constant 0 : index
      %c0_8 = arith.constant 0 : index
      %14 = vector.load %arg3[%c0_6, %c0_7, %c0_8] : memref<1x2x128xf32, #tpu.memory_space<vmem>>, vector<1x2x128xf32>
      %15 = vector.shape_cast %14 : vector<1x2x128xf32> to vector<2x128xf32>
      %16 = vector.shape_cast %7 : vector<2x128xf32> to vector<1x2x128xf32>
      tpu.vector_store %arg3[%c0_6, %c0_7, %c0_8], %16 {strides = array<i32>} : memref<1x2x128xf32, #tpu.memory_space<vmem>>, vector<1x2x128xf32>,
    } else {
    }
    %c0_i32_4 = arith.constant 0 : i32
    %11 = arith.cmpi sgt, %arg1, %c0_i32_4 : i32
    %12 = arith.extui %11 : i1 to i32
    %c0_i32_5 = arith.constant 0 : i32
    %13 = arith.cmpi ne, %12, %c0_i32_5 : i32
    scf.if %13 {
      %c0_6 = arith.constant 0 : index
      %c0_7 = arith.constant 0 : index
      %c0_8 = arith.constant 0 : index
      %14 = vector.load %arg3[%c0_6, %c0_7, %c0_8] : memref<1x2x128xf32, #tpu.memory_space<vmem>>, vector<1x2x128xf32>
      %15 = vector.shape_cast %14 : vector<1x2x128xf32> to vector<2x128xf32>
      %16 = arith.addf %15, %7 : vector<2x128xf32>
      %c0_9 = arith.constant 0 : index
      %c0_10 = arith.constant 0 : index
      %c0_11 = arith.constant 0 : index
      %17 = vector.load %arg3[%c0_9, %c0_10, %c0_11] : memref<1x2x128xf32, #tpu.memory_space<vmem>>, vector<1x2x128xf32>
      %18 = vector.shape_cast %17 : vector<1x2x128xf32> to vector<2x128xf32>
      %19 = vector.shape_cast %16 : vector<2x128xf32> to vector<1x2x128xf32>
      tpu.vector_store %arg3[%c0_9, %c0_10, %c0_11], %19 {strides = array<i32>} : memref<1x2x128xf32, #tpu.memory_space<vmem>>, vector<1x2x128xf32>,
    } else {
    }
    return
  }
  func.func @transform_0(%arg0: i32, %arg1: i32) -> (i32, i32, i32, i32) {
    %c0_i32 = arith.constant 0 : i32
    %c0_i32_0 = arith.constant 0 : i32
    %c0_i32_1 = arith.constant 0 : i32
    return %arg0, %arg1, %c0_i32, %c0_i32_0 : i32, i32, i32, i32
  }
  func.func @transform_1(%arg0: i32, %arg1: i32) -> (i32, i32, i32) {
    %c0_i32 = arith.constant 0 : i32
    %c0_i32_0 = arith.constant 0 : i32
    %c0_i32_1 = arith.constant 0 : i32
    return %arg0, %c0_i32, %c0_i32_0 : i32, i32, i32
  }
}

</mosaic_0001>

<bundles_post_ra>
// kernel: tpu_custom_call.1
= control target key start
LH: loop header
LB: loop body
LE: loop exit
PB: predicated region body
PF: predicated region fallthrough
CT: control target
= control target key end

     0   :  { %6 = vsyncpa [#allocation3], 0  ;;  %s829_s0 = inlined_call_operand.hbm [shape: f32[2,4,4,132], index: 0, kind: input, shape index: {}]   ;;  %s830_s1 = inlined_call_operand.hbm [shape: f32[2,2,128], index: 1, kind: output, shape index: {}]  }
   0x1   :  { %8 = vsyncpa [#allocation3 + $0x1], 0 }
   0x2   :  { %9 = vsyncpa [#allocation4], 0 }
   0x3   :  { %11 = vsyncpa [#allocation4 + $0x1], 0  ;;  %s608_s6 = smov 0   ;;  %s610_s7 = smov 0  }
   0x4   :  { %s612_s8 = smov 0   ;;  %s614_s9 = smov 0  }
   0x5   :  { %s616_s10 = smov 0   ;;  %s618_s11 = smov 0  }
   0x6   :  { %s620_s12 = smov 0   ;;  %s622_s13 = smov 0  }
   0x7   :  { %s624_s14 = smov 0   ;;  %s626_s15 = smov 0  }
   0x8   :  { %s628_s16 = smov 0  }
   0x9 LB: > { %s318_s17 = sadd.s32 4294967295, %s592_s16   ;;  %s319_s18 = sadd.s32 4294967294, %s592_s16   ;;  %s592_s16 = sphi %s628_s16, %s17_s16   ;;  %s588_s15 = sphi %s626_s15, %s853_s15   ;;  %s584_s14 = sphi %s624_s14, %s852_s14   ;;  %s580_s13 = sphi %s622_s13, %s851_s13   ;;  %s576_s12 = sphi %s620_s12, %s850_s12   ;;  %s572_s11 = sphi %s618_s11, %s849_s11   ;;  %s568_s10 = sphi %s616_s10, %s848_s10   ;;  %s564_s9 = sphi %s614_s9, %s847_s9   ;;  %s560_s8 = sphi %s612_s8, %s846_s8   ;;  %s556_s7 = sphi %s610_s7, %s845_s7   ;;  %s552_s6 = sphi %s608_s6, %s844_s6  }
   0xa   : > { %s26_s19 = sadd.s32 1, %s584_s14  ;;  %s29_s20 = sadd.s32 1, %s588_s15 }
   0xb   : > { %p27_p0 = scmp.ge.s32.totalorder %s26_s19, 4  ;;  %s38_s21 = sadd.s32 1, %s572_s11 }
   0xc   : > { %p45_p1 = scmp.ne.s32.totalorder %s572_s11, %s568_s10  ;;  %p46_p2 = scmp.eq.s32.totalorder %s592_s16, 0 }
   0xd   : > { %s855_s19 = smov (%p27_p0, %s26_s19), 0  ;;  %s857_s20 = smov (!%p27_p0, %s29_s20), %s588_s15 }
   0xe   : > { %s34_s22 = ssub.s32 %s584_s14, %s855_s19  ;;  %p674_p3 = por %p46_p2, %p45_p1 }
   0xf   : > { %p31_p4 = scmp.ge.s32.totalorder %s857_s20, 2  ;;  %p51_p5 = scmp.ne.s32.totalorder %s568_s10, %s564_s9 }
  0x10   : > { %p52_p6 = scmp.eq.s32.totalorder %s318_s17, 0  ;;  %s64_s24 = sadd.s32 1, %s560_s8 }
  0x11   : > { %s859_s20 = smov (%p31_p4, %s857_s20), 0  ;;  %p74_p8 = scmp.ne.s32.totalorder %s560_s8, %s556_s7 }
  0x12   : > { %834 = sst [smem:[#allocation8_spill]] %s859_s20  ;;  %p682_p7 = por %p52_p6, %p51_p5 }
  0x13   : > { %s33_s26 = ssub.s32 %s588_s15, %s859_s20  ;;  %p75_p9 = scmp.eq.s32.totalorder %s318_s17, 7 }
  0x14   : > { %s35_s27 = sor.u32 %s34_s22, %s33_s26  ;;  %p62_p10 = scmp.eq.s32.totalorder %s33_s26, 0 }
  0x15   : > { %p36_p11 = scmp.eq.s32.totalorder %s35_s27, 0  ;;  %p690_p12 = por %p75_p9, %p74_p8 }
  0x16   : > { %s695_s29 = scalar_select %p62_p10, %s560_s8, %s64_s24  }
  0x17   : > { %s836_s28 = scalar_select %p690_p12, 1, 0 }
  0x18   : > { %s698_s30 = scalar_select %p36_p11, %s572_s11, %s38_s21  }
  0x19   : > { %p80_p13 = scmp.ne.s32.totalorder %s556_s7, %s552_s6  ;;  %p81_p0 = scmp.eq.s32.totalorder %s319_s18, 7 }
  0x1a   : > { %p347_p1 = scmp.lt.s32.totalorder %s592_s16, 8  ;;  %s101_s3 = sand.u32 1, %s572_s11  }
  0x1b   : > { %p703_p2 = por %p81_p0, %p80_p13  ;;  %s322_s4 = sshll.u32 %s101_s3, 3 }
  0x1c   : > { %s323_s5 = sshll.u32 %s584_s14, 1  ;;  %s324_s9 = sshll.u32 %s588_s15, 3 }
  0x1d   : > { %s837_s2 = scalar_select %p703_p2, 1, 0 }
  0x1e   : > { %s105_s17 = scalar_lea.vmem [#allocation2], %s322_s4  ;;  %s111_s26 = sadd.s32 %s324_s9, %s323_s5 }
  0x1f   : > { %s115_s22 = sshll.u32 %s105_s17, 4  ;;  %s325_s21 = sshll.u32 %s111_s26, 6  ;;  %s710_s22 = int_to_ptr.vmem [resolvable:$true] %s115_s22 }
  0x20   : > { %p714_p4 = pnand %p347_p1, %p674_p3  ;;  %s721_s20 = scalar_lea.hbm %s829_s0, %s325_s21 }
  0x21   : > { %s102_s4 = scalar_lea.sflag [#allocation3], %s101_s3  ;;  %s440_s5 = scalar_lea.hbm %s721_s20, 128 }
  0x22   : > { %p441_p8 = scmp.ne.s32.totalorder %s721_s20, %s440_s5  ;;  %p442_p3 = pneg %p714_p4 }
  0x23   : > { %s445_s17 = scalar_lea.hbm %s829_s0, 1024  ;;  %p446_p11 = scmp.lt.u32.totalorder %s721_s20, %s829_s0 }
  0x24   : > { %p443_p9 = pnand %p442_p3, %p441_p8  ;;  %p447_p13 = scmp.lt.u32.totalorder %s445_s17, %s440_s5 }
  0x25   : > { %p449_p1 = scmp.lt.u32.totalorder %s440_s5, %s721_s20 }
  0x26   : > { %p444_p10 = pneg %p443_p9  ;;  %p448_p0 = por %p447_p13, %p446_p11 }
  0x28   : > { %p450_p5 = por %p449_p1, %p448_p0 }
  0x2a   : > { %p451_p6 = pnand %p450_p5, %p444_p10 }
  0x2c   : > { %454 = shalt.err (!%p451_p6)
}
  0x2d   : > { %s455_s3 = scalar_lea.vmem %s710_s22, 128  ;;  %s594_s18 = smov [#allocation2]  }
  0x2e   : > { %p456_p8 = scmp.ne.s32.totalorder %s710_s22, %s455_s3  ;;  %s460_s27 = sshll.u32 %s594_s18, 4  ;;  %s461_s27 = int_to_ptr.vmem [resolvable:$false] %s460_s27 }
  0x2f   : > { %s462_s23 = scalar_lea.vmem %s461_s27, 256  ;;  %p463_p12 = scmp.lt.s32.totalorder %s710_s22, %s461_s27 }
  0x30   : > { %p458_p9 = pnand %p456_p8, %p442_p3  ;;  %p464_p11 = scmp.lt.s32.totalorder %s462_s23, %s455_s3 }
  0x32   : > { %p459_p2 = pneg %p458_p9  ;;  %p465_p13 = por %p464_p11, %p463_p12 }
  0x34   : > { %p466_p0 = pnand %p465_p13, %p459_p2 }
  0x36   : > { %469 = shalt.err (!%p466_p0)
}
  0x37   : > { %342 = dma.hbm_to_vmem [thread:$0]  (!%p714_p4), %s721_s20, 128, %s710_s22, %s102_s4  }
  0x38   : > { %p839_p5 = scmp.lt.s32.totalorder %s592_s16, 9  ;;  %p840_p6 = scmp.ge.s32.totalorder %s592_s16, 1 }
  0x3a   : > { %p121_p3 = pnand %p840_p6, %p839_p5 }
  0x3b   : > { %s126_s5 = sand.u32 (!%p121_p3), 1, %s568_s10  }
  0x3c   : > { %124 = sbr.rel (%p121_p3) target bundleno = 356 (0x164), region = 24  ;;  %s327_s9 = sshll.u32 (!%p121_p3), %s126_s5, 3 }
  0x3d   : > { %s127_s17 = scalar_lea.sflag (!%p121_p3), [#allocation3], %s126_s5  ;;  %s130_s26 = scalar_lea.vmem (!%p121_p3), [#allocation2], %s327_s9 }
  0x43   : > { %543 = dma.done.wait (%p682_p7), %s127_s17, 128  }
  0x44   : > { %545 = vsyncadd (%p682_p7), %s127_s17, 4294967168  ;;  %s146_s24 = sand.u32 1, %s556_s7   ;;  %vm153_vm0 = vcmask 1043472   ;;  %v149_v0 = vld [vmem:[%s130_s26] sm:$0xff]  ;;  %vm161_vm1 = vcmask 11264   ;;  %vm187_vm2 = vcmask 1040384  }
  0x45   : > { %s762_s20 = sshll.u32 %s146_s24, 1  ;;  %v151_v1 = vcombine.high %v149_v0, %v149_v0  ;;  %v154_v2 = vsel %vm153_vm0, %v149_v0, 0.0  ;;  %v169_v3 = vmul.f32 %v149_v0, %v149_v0  ;;  %p329_p7 = scmp.ne.s32.totalorder %s576_s12, 0 }
  0x46   : > { %v155_v4 = vrot.slane %v154_v2, 4  ;;  %s148_s25 = scalar_lea.vmem [#allocation5], %s762_s20  ;;  %s595_s22 = smov (!%p329_p7), 126   ;;  %vm200_vm3 = vcmask (!%p329_p7), 1031168  }
  0x47   : > { %v162_v5 = vsel %vm161_vm1, %v151_v1, 0.0  ;;  %v171_v6 = vcombine.high %v169_v3, %v169_v3  ;;  %v173_v7 = vsel %vm153_vm0, %v169_v3, 0.0 }
  0x48   : > { %v156_v8 = vadd.f32 %v155_v4, %v154_v2  ;;  %v163_v9 = vrot.slane %v162_v5, 4  ;;  %v174_v10 = vrot.slane %v173_v7, 4 }
  0x49   : > { %v180_v11 = vsel %vm161_vm1, %v171_v6, 0.0 }
  0x4a   : > { %v157_v12 = vrot.slane %v156_v8, 2  ;;  %v164_v13 = vadd.f32 %v163_v9, %v162_v5  ;;  %v175_v14 = vadd.f32 %v174_v10, %v173_v7  ;;  %v181_v15 = vrot.slane %v180_v11, 4 }
  0x4c   : > { %v158_v16 = vadd.f32 %v157_v12, %v156_v8  ;;  %v165_v17 = vrot.slane %v164_v13, 2  ;;  %v176_v18 = vrot.slane %v175_v14, 2  ;;  %v182_v19 = vadd.f32 %v181_v15, %v180_v11 }
  0x4e   : > { %v159_v20 = vrot.slane %v158_v16, 1  ;;  %v166_v21 = vadd.f32 %v165_v17, %v164_v13  ;;  %v177_v22 = vadd.f32 %v176_v18, %v175_v14  ;;  %v183_v23 = vrot.slane %v182_v19, 2 }
  0x50   : > { %v160_v24 = vadd.f32 %v159_v20, %v158_v16  ;;  %v167_v25 = vrot.slane %v166_v21, 1  ;;  %v178_v26 = vrot.slane %v177_v22, 1  ;;  %v184_v27 = vadd.f32 %v183_v23, %v182_v19  ;;  %193 = sbr.rel (%p329_p7) target bundleno = 206 (0xce), region = 32 }
  0x52   : > { %v168_v28 = vadd.f32 %v167_v25, %v166_v21  ;;  %v179_v29 = vadd.f32 %v178_v26, %v177_v22  ;;  %v185_v30 = vrot.slane %v184_v27, 1 }
  0x54   : > { %v186_v31 = vadd.f32 %v185_v30, %v184_v27  ;;  %v188_v32 = vsel %vm187_vm2, %v160_v24, %v179_v29 }
  0x55   : > { %196 = vrot.lane.b32.xlu0 (!%p329_p7), %v188_v32, %s595_s22 }
  0x56   : > { %v189_v33 = vsel %vm187_vm2, %v168_v28, %v186_v31 }
  0x59   : > { %198 = vrot.lane.b32.xlu0 %v189_v33, %s595_s22 }
  0xc7   : > { %v197_v34 = vpop.permute.xlu0 %196 }
  0xcb   : > { %v199_v35 = vpop.permute.xlu0 %198 }
  0xcc   : > { %v201_v36 = vsel %vm200_vm3, %v197_v34, %v199_v35 }
  0xcd   : > { %203 = vst [vmem:[%s148_s25] sm:$0x3] %v201_v36 }
  0xce PF: > { %p330_p12 = scmp.le.s32.totalorder %s576_s12, 0 }
  0xcf   : > { %s596_s4 = smov (!%p330_p12), 126   ;;  %vm215_vm4 = vcmask (!%p330_p12), 1031168  }
  0xd0   : > { %207 = sbr.rel (%p330_p12) target bundleno = 331 (0x14b), region = 36  ;;  %211 = vrot.lane.b32.xlu0 (!%p330_p12), %v188_v32, %s596_s4 }
  0xd4   : > { %213 = vrot.lane.b32.xlu0 (!%p330_p12), %v189_v33, %s596_s4  ;;  %v208_v38 = vld [vmem:[%s148_s25] sm:$0x3] (!%p330_p12) }
 0x142   : > { %v212_v37 = vpop.permute.xlu0 %211 }
 0x146   : > { %v214_v39 = vpop.permute.xlu0 %213 }
 0x147   : > { %v216_v40 = vsel %vm215_vm4, %v212_v37, %v214_v39 }
 0x148   : > { %v218_v41 = vadd.f32 %v216_v40, %v208_v38 }
 0x14a   : > { %219 = vst [vmem:[%s148_s25] sm:$0x3] %v218_v41 }
 0x14b PF: > { %s332_s21 = sshll.u32 %s580_s13, 5  ;;  %s234_s27 = sshll.u32 %s148_s25, 4  ;;  %s235_s27 = int_to_ptr.vmem [resolvable:$true] %s234_s27 }
 0x14c   : > { %s771_s12 = scalar_lea.hbm %s830_s1, %s332_s21  ;;  %s221_s23 = scalar_lea.sflag [#allocation4], %s146_s24 }
 0x14d   : > { %s470_s5 = scalar_lea.vmem %s235_s27, 32  ;;  %p841_p4 = scmp.ne.s32.totalorder %s836_s28, 0 }
 0x14e   : > { %p471_p2 = scmp.ne.s32.totalorder %s235_s27, %s470_s5  ;;  %s597_s9 = smov [#allocation5]  }
 0x14f   : > { %s474_s17 = sshll.u32 %s597_s9, 4  ;;  %s475_s17 = int_to_ptr.vmem [resolvable:$false] %s474_s17 }
 0x150   : > { %p472_p10 = pnand %p471_p2, %p841_p4  ;;  %s476_s26 = scalar_lea.vmem %s475_s17, 64 }
 0x151   : > { %p477_p8 = scmp.lt.s32.totalorder %s235_s27, %s475_s17  ;;  %p478_p9 = scmp.lt.s32.totalorder %s476_s26, %s470_s5 }
 0x152   : > { %p473_p1 = pneg %p472_p10 }
 0x153   : > { %p479_p11 = por %p478_p9, %p477_p8 }
 0x155   : > { %p480_p13 = pnand %p479_p11, %p473_p1 }
 0x157   : > { %483 = shalt.err (!%p480_p13)
}
 0x158   : > { %s484_s13 = scalar_lea.hbm %s771_s12, 32  ;;  %s488_s25 = scalar_lea.hbm %s830_s1, 64 }
 0x159   : > { %p485_p0 = scmp.ne.s32.totalorder %s771_s12, %s484_s13  ;;  %p489_p3 = scmp.lt.u32.totalorder %s771_s12, %s830_s1 }
 0x15a   : > { %p490_p7 = scmp.lt.u32.totalorder %s488_s25, %s484_s13  ;;  %p492_p2 = scmp.lt.u32.totalorder %s484_s13, %s771_s12 }
 0x15b   : > { %p486_p5 = pnand %p485_p0, %p841_p4 }
 0x15c   : > { %p491_p12 = por %p490_p7, %p489_p3 }
 0x15d   : > { %p487_p6 = pneg %p486_p5 }
 0x15e   : > { %p493_p10 = por %p492_p2, %p491_p12 }
 0x160   : > { %p494_p1 = pnand %p493_p10, %p487_p6 }
 0x162   : > { %497 = shalt.err (!%p494_p1)
}
 0x163   : > { %337 = dma.vmem_to_hbm [thread:$0]  (%p841_p4), %s235_s27, 32, %s771_s12, %s221_s23  }
 0x164 PF: > { %p348_p8 = scmp.ge.s32.totalorder %s592_s16, 2  ;;  %s246_s21 = sand.u32 1, %s552_s6  }
 0x165   : > { %p842_p9 = scmp.ne.s32.totalorder %s837_s2, 0  ;;  %s247_s3 = scalar_lea.sflag [#allocation4], %s246_s21 }
 0x167   : > { %p344_p11 = pnand %p348_p8, %p842_p9 }
 0x169   : > { %547 = dma.done.wait (!%p344_p11), %s247_s3, 32  }
 0x16a   : > { %549 = vsyncadd (!%p344_p11), %s247_s3, 4294967264  ;;  %s17_s16 = sadd.s32 1, %s592_s16   ;;  %s843_s28 = sld [smem:[#allocation8_spill]] }
 0x16b   : > { %p14_p13 = scmp.ge.s32.totalorder %s17_s16, 10   ;;  %s844_s6 = smov %s556_s7 }
 0x16c   : > { %s845_s7 = smov %s560_s8  ;;  %s846_s8 = smov %s695_s29 }
 0x16d   : > { %s847_s9 = smov %s568_s10  ;;  %s848_s10 = smov %s572_s11 }
 0x16e   : > { %s849_s11 = smov %s698_s30  ;;  %s850_s12 = smov %s584_s14 }
 0x16f   : > { %s851_s13 = smov %s588_s15  ;;  %s852_s14 = smov %s855_s19 }
 0x170   : > { %s853_s15 = smov %s843_s28  ;;  %16 = sbr.rel (!%p14_p13) target bundleno = 9 (0x9), region = 77 }
 0x177   :  { %252 = vsyncpa [#allocation3], 1 }
 0x178   :  { %254 = vsyncpa [#allocation3 + $0x1], 1 }
 0x179   :  { %255 = vsyncpa [#allocation4], 1 }
 0x17a   :  { %257 = vsyncpa [#allocation4 + $0x1], 1 }

</bundles_post_ra>
